<compile_context>
chip_gen: v5e
topology: v5e:2x2
jax: 0.10.0
libtpu: 0.0.40
codegen_flags: <defaults>
</compile_context>

<pallas_src>
import functools

import jax
import jax.numpy as jnp
from jax.experimental import pallas as pl
from jax.experimental.pallas import tpu as pltpu

LANE = 128
SUBLANE = 8


def _round_up(n, m):
    return ((n + m - 1) // m) * m


# ---------------------------------------------------------------------------
# Kernel
# ---------------------------------------------------------------------------
def _encoder_kernel(n_hidden, conditional, *refs):
    """refs layout (conditional):
         x, c, W0x, W0c, b0, (W_i, b_i) for i=1..n_hidden-1, W_head, b_head, out
       refs layout (unconditional):
         x,    W0,       b0, (W_i, b_i) for i=1..n_hidden-1, W_head, b_head, out
    Weights are [in, out] (PyTorch Linear weight transposed); biases [1, out]
    in float32.  MXU accumulation is float32; elementwise (bias / ReLU) f32.
    """
    idx = 0
    x = refs[idx][...]; idx += 1

    if conditional:
        c = refs[idx][...]; idx += 1
        w0x = refs[idx][...]; idx += 1
        w0c = refs[idx][...]; idx += 1
        b0 = refs[idx][...]; idx += 1
        h = (jnp.dot(x, w0x, preferred_element_type=jnp.float32)
             + jnp.dot(c, w0c, preferred_element_type=jnp.float32)
             + b0)
    else:
        w0 = refs[idx][...]; idx += 1
        b0 = refs[idx][...]; idx += 1
        h = jnp.dot(x, w0, preferred_element_type=jnp.float32) + b0
    h = jnp.maximum(h, 0.0)

    for _ in range(1, n_hidden):
        w = refs[idx][...]; idx += 1
        b = refs[idx][...]; idx += 1
        h = jnp.dot(h.astype(w.dtype), w, preferred_element_type=jnp.float32) + b
        h = jnp.maximum(h, 0.0)

    w_head = refs[idx][...]; idx += 1
    b_head = refs[idx][...]; idx += 1
    out_ref = refs[idx]
    out = jnp.dot(h.astype(w_head.dtype), w_head,
                  preferred_element_type=jnp.float32) + b_head
    out_ref[...] = out.astype(out_ref.dtype)


# ---------------------------------------------------------------------------
# Parameter packing: split first layer, fuse heads, pad to lane multiples
# ---------------------------------------------------------------------------
def pack_encoder_params(params, x_dim, condition_size, conditional,
                        dtype=jnp.float32):
    hidden = params["hidden"]
    wm, bm = params["mean"]
    wv, bv = params["logvar"]
    latent = wm.shape[1]
    head_pad = _round_up(2 * latent, LANE)   # fused (means | logvar) lanes

    def pad_w(w, in_pad, out_pad):
        w = w.astype(dtype)
        return jnp.pad(w, ((0, in_pad - w.shape[0]), (0, out_pad - w.shape[1])))

    def pad_b(b, out_pad):
        b = jnp.reshape(b, (1, -1)).astype(jnp.float32)
        return jnp.pad(b, ((0, 0), (0, out_pad - b.shape[1])))

    hidden_out = [w.shape[1] for (w, _) in hidden]
    hidden_out_pad = [_round_up(h, LANE) for h in hidden_out]

    x_pad = _round_up(x_dim, LANE)
    c_pad = _round_up(condition_size, LANE) if conditional else 0

    w0, b0 = hidden[0]
    if conditional:
        w0x = pad_w(w0[:x_dim, :], x_pad, hidden_out_pad[0])
        w0c = pad_w(w0[x_dim:, :], c_pad, hidden_out_pad[0])
        first = (w0x, w0c, pad_b(b0, hidden_out_pad[0]))
    else:
        first = (pad_w(w0, x_pad, hidden_out_pad[0]), pad_b(b0, hidden_out_pad[0]))

    rest = []
    for i in range(1, len(hidden)):
        w, b = hidden[i]
        rest.append((pad_w(w, hidden_out_pad[i - 1], hidden_out_pad[i]),
                     pad_b(b, hidden_out_pad[i])))

    # Fused head: [H_last_pad, head_pad]  lanes = [means(0:L) | logvar(L:2L) | 0-pad]
    w_head = pad_w(jnp.concatenate([wm, wv], axis=1), hidden_out_pad[-1], head_pad)
    b_head = pad_b(jnp.concatenate([jnp.reshape(bm, (1, -1)),
                                    jnp.reshape(bv, (1, -1))], axis=1), head_pad)

    return {
        "conditional": conditional,
        "dtype": dtype,
        "x_dim": x_dim,
        "c_dim": condition_size,
        "x_pad": x_pad,
        "c_pad": c_pad,
        "latent": latent,
        "head_pad": head_pad,
        "first": first,
        "rest": rest,
        "head": (w_head, b_head),
    }


# ---------------------------------------------------------------------------
# Wrapper
# ---------------------------------------------------------------------------
def encoder_forward(x, c, packed, batch_tile=512):
    """x: [B, x_dim] f32, c: [B, c_dim] f32 (or None).  Returns (means, log_vars)."""
    conditional = packed["conditional"]
    dtype = packed["dtype"]
    latent = packed["latent"]
    head_pad = packed["head_pad"]
    x_pad_dim = packed["x_pad"]

    B = x.shape[0]
    batch_tile = _round_up(batch_tile, SUBLANE)
    TB = min(batch_tile, _round_up(B, SUBLANE))
    B_pad = _round_up(B, TB)
    num_tiles = B_pad // TB

    def pad_act(a, d_pad):
        a = a.astype(dtype)
        return jnp.pad(a, ((0, B_pad - a.shape[0]), (0, d_pad - a.shape[1])))

    flat_args = [pad_act(x, x_pad_dim)]
    in_specs = [pl.BlockSpec((TB, x_pad_dim), lambda i: (i, 0))]

    if conditional:
        c_pad_dim = packed["c_pad"]
        flat_args.append(pad_act(c, c_pad_dim))
        in_specs.append(pl.BlockSpec((TB, c_pad_dim), lambda i: (i, 0)))
        param_list = list(packed["first"])          # W0x, W0c, b0
    else:
        param_list = list(packed["first"])          # W0, b0

    for (w, b) in packed["rest"]:
        param_list += [w, b]
    w_head, b_head = packed["head"]
    param_list += [w_head, b_head]

    for p in param_list:
        flat_args.append(p)
        # Full-extent block, constant index map -> resident in VMEM across grid.
        in_specs.append(pl.BlockSpec(p.shape, lambda i: (0, 0)))

    n_hidden = 1 + len(packed["rest"])

    # Cost estimate for XLA's scheduler.
    flops = 0
    for p in param_list:
        if p.shape[0] > 1:  # weights (biases have leading dim 1)
            flops += 2 * B_pad * p.shape[0] * p.shape[1]
    bytes_accessed = sum(int(a.size) * a.dtype.itemsize for a in flat_args)
    bytes_accessed += B_pad * head_pad * 4

    kernel = functools.partial(_encoder_kernel, n_hidden, conditional)
    out = pl.pallas_call(
        kernel,
        out_shape=jax.ShapeDtypeStruct((B_pad, head_pad), jnp.float32),
        grid=(num_tiles,),
        in_specs=in_specs,
        out_specs=pl.BlockSpec((TB, head_pad), lambda i: (i, 0)),
        compiler_params=pltpu.CompilerParams(
            dimension_semantics=("parallel",),   # 2 TCs on v7x; harmless elsewhere
            vmem_limit_bytes=64 * 1024 * 1024,
        ),
        cost_estimate=pl.CostEstimate(
            flops=flops, transcendentals=0, bytes_accessed=bytes_accessed),
    )(*flat_args)

    means = out[:B, :latent]
    log_vars = out[:B, latent:2 * latent]
    return means, log_vars


# ---------------------------------------------------------------------------
# Deterministic parameter init (synthetic — no checkpoint loading)
# ---------------------------------------------------------------------------
def init_encoder_params(key, layer_sizes, latent_size, conditional, condition_size):
    layer_sizes = list(layer_sizes)
    if conditional:
        layer_sizes[0] += condition_size

    params = {"hidden": []}
    for in_size, out_size in zip(layer_sizes[:-1], layer_sizes[1:]):
        key, kw, kb = jax.random.split(key, 3)
        w = jax.random.normal(kw, (in_size, out_size), jnp.float32) * 0.1
        b = jax.random.normal(kb, (1, out_size), jnp.float32) * 0.1
        params["hidden"].append((w, b))

    for name in ("mean", "logvar"):
        key, kw, kb = jax.random.split(key, 3)
        w = jax.random.normal(kw, (layer_sizes[-1], latent_size), jnp.float32) * 0.1
        b = jax.random.normal(kb, (1, latent_size), jnp.float32) * 0.1
        params[name] = (w, b)
    return params


# Pure-JAX reference for correctness checking.
def encoder_reference(x, c, params, conditional=True):
    if conditional:
        x = jnp.concatenate([x, c], axis=-1)
    h = x
    for (w, b) in params["hidden"]:
        h = jnp.maximum(h @ w + b, 0.0)
    wm, bm = params["mean"]
    wv, bv = params["logvar"]
    return h @ wm + bm, h @ wv + bv


if __name__ == "__main__":
    # Small, module-consistent shapes.
    B = 8
    x_dim = 16
    condition_size = 16
    layer_sizes = [x_dim, 32, 32]   # layer_sizes[0] gets +condition_size inside init
    latent_size = 8
    conditional = True

    key = jax.random.PRNGKey(0)
    key, kx, kc = jax.random.split(key, 3)
    x = jax.random.normal(kx, (B, x_dim), jnp.float32)
    c = jax.random.normal(kc, (B, condition_size), jnp.float32)

    params = init_encoder_params(
        key, layer_sizes, latent_size, conditional, condition_size
    )
    # Keep f32 here so the correctness check is tight; pass dtype=jnp.bfloat16
    # for the v6e/v7x fast path (f32 accumulation is kept inside the kernel).
    packed = pack_encoder_params(
        params, x_dim, condition_size, conditional, dtype=jnp.float32
    )

    means, log_vars = encoder_forward(x, c, packed)
    jax.block_until_ready((means, log_vars))

    ref_means, ref_log_vars = encoder_reference(x, c, params, conditional=conditional)
    assert means.shape == (B, latent_size) and log_vars.shape == (B, latent_size)
    assert jnp.allclose(means, ref_means, atol=1e-4, rtol=1e-4)
    assert jnp.allclose(log_vars, ref_log_vars, atol=1e-4, rtol=1e-4)

    print("KERNEL_OK")
</pallas_src>

<mosaic_0001>
module attributes {stable_mosaic.version = 11 : i64} {
  func.func @_encoder_kernel(%arg0: i32, %arg1: memref<8x128xf32, #tpu.memory_space<vmem>>, %arg2: memref<8x128xf32, #tpu.memory_space<vmem>>, %arg3: memref<128x128xf32, #tpu.memory_space<vmem>>, %arg4: memref<128x128xf32, #tpu.memory_space<vmem>>, %arg5: memref<1x128xf32, #tpu.memory_space<vmem>>, %arg6: memref<128x128xf32, #tpu.memory_space<vmem>>, %arg7: memref<1x128xf32, #tpu.memory_space<vmem>>, %arg8: memref<128x128xf32, #tpu.memory_space<vmem>>, %arg9: memref<1x128xf32, #tpu.memory_space<vmem>>, %arg10: memref<8x128xf32, #tpu.memory_space<vmem>>) attributes {dimension_semantics = [#tpu.dimension_semantics<parallel>], iteration_bounds = array<i64: 1>, scalar_prefetch = 0 : i64, scratch_operands = 0 : i64, tpu.core_type = #tpu.core_type<tc>, window_params = [{transform_indices = @transform_0, window_bounds = array<i64: 8, 128>}, {transform_indices = @transform_1, window_bounds = array<i64: 8, 128>}, {pipeline_mode = #tpu.pipeline_mode<synchronous>, transform_indices = @transform_2, window_bounds = array<i64: 128, 128>}, {pipeline_mode = #tpu.pipeline_mode<synchronous>, transform_indices = @transform_3, window_bounds = array<i64: 128, 128>}, {pipeline_mode = #tpu.pipeline_mode<synchronous>, transform_indices = @transform_4, window_bounds = array<i64: 1, 128>}, {pipeline_mode = #tpu.pipeline_mode<synchronous>, transform_indices = @transform_5, window_bounds = array<i64: 128, 128>}, {pipeline_mode = #tpu.pipeline_mode<synchronous>, transform_indices = @transform_6, window_bounds = array<i64: 1, 128>}, {pipeline_mode = #tpu.pipeline_mode<synchronous>, transform_indices = @transform_7, window_bounds = array<i64: 128, 128>}, {pipeline_mode = #tpu.pipeline_mode<synchronous>, transform_indices = @transform_8, window_bounds = array<i64: 1, 128>}, {transform_indices = @transform_9, window_bounds = array<i64: 8, 128>}]} {
    %c0 = arith.constant 0 : index
    %c0_0 = arith.constant 0 : index
    %0 = vector.load %arg1[%c0, %c0_0] : memref<8x128xf32, #tpu.memory_space<vmem>>, vector<8x128xf32>
    %c0_1 = arith.constant 0 : index
    %c0_2 = arith.constant 0 : index
    %1 = vector.load %arg2[%c0_1, %c0_2] : memref<8x128xf32, #tpu.memory_space<vmem>>, vector<8x128xf32>
    %c0_3 = arith.constant 0 : index
    %c0_4 = arith.constant 0 : index
    %2 = vector.load %arg3[%c0_3, %c0_4] : memref<128x128xf32, #tpu.memory_space<vmem>>, vector<128x128xf32>
    %c0_5 = arith.constant 0 : index
    %c0_6 = arith.constant 0 : index
    %3 = vector.load %arg4[%c0_5, %c0_6] : memref<128x128xf32, #tpu.memory_space<vmem>>, vector<128x128xf32>
    %c0_7 = arith.constant 0 : index
    %c0_8 = arith.constant 0 : index
    %4 = vector.load %arg5[%c0_7, %c0_8] : memref<1x128xf32, #tpu.memory_space<vmem>>, vector<1x128xf32>
    %cst = arith.constant dense<0.000000e+00> : vector<8x128xf32>
    %5 = tpu.matmul %0, %2, %cst {dimension_numbers = #tpu.dot_dimension_numbers<[1], [0], [0], [1], [0, 0, 1, 1], [], []>} : vector<8x128xf32>, vector<128x128xf32>, vector<8x128xf32> -> vector<8x128xf32>
    %cst_9 = arith.constant dense<0.000000e+00> : vector<8x128xf32>
    %6 = tpu.matmul %1, %3, %cst_9 {dimension_numbers = #tpu.dot_dimension_numbers<[1], [0], [0], [1], [0, 0, 1, 1], [], []>} : vector<8x128xf32>, vector<128x128xf32>, vector<8x128xf32> -> vector<8x128xf32>
    %7 = arith.addf %5, %6 : vector<8x128xf32>
    %8 = vector.broadcast %4 : vector<1x128xf32> to vector<8x128xf32>
    %9 = arith.addf %7, %8 : vector<8x128xf32>
    %cst_10 = arith.constant 0.000000e+00 : f32
    %10 = vector.broadcast %cst_10 : f32 to vector<8x128xf32>
    %11 = arith.maximumf %9, %10 : vector<8x128xf32>
    %c0_11 = arith.constant 0 : index
    %c0_12 = arith.constant 0 : index
    %12 = vector.load %arg6[%c0_11, %c0_12] : memref<128x128xf32, #tpu.memory_space<vmem>>, vector<128x128xf32>
    %c0_13 = arith.constant 0 : index
    %c0_14 = arith.constant 0 : index
    %13 = vector.load %arg7[%c0_13, %c0_14] : memref<1x128xf32, #tpu.memory_space<vmem>>, vector<1x128xf32>
    %cst_15 = arith.constant dense<0.000000e+00> : vector<8x128xf32>
    %14 = tpu.matmul %11, %12, %cst_15 {dimension_numbers = #tpu.dot_dimension_numbers<[1], [0], [0], [1], [0, 0, 1, 1], [], []>} : vector<8x128xf32>, vector<128x128xf32>, vector<8x128xf32> -> vector<8x128xf32>
    %15 = vector.broadcast %13 : vector<1x128xf32> to vector<8x128xf32>
    %16 = arith.addf %14, %15 : vector<8x128xf32>
    %cst_16 = arith.constant 0.000000e+00 : f32
    %17 = vector.broadcast %cst_16 : f32 to vector<8x128xf32>
    %18 = arith.maximumf %16, %17 : vector<8x128xf32>
    %c0_17 = arith.constant 0 : index
    %c0_18 = arith.constant 0 : index
    %19 = vector.load %arg8[%c0_17, %c0_18] : memref<128x128xf32, #tpu.memory_space<vmem>>, vector<128x128xf32>
    %c0_19 = arith.constant 0 : index
    %c0_20 = arith.constant 0 : index
    %20 = vector.load %arg9[%c0_19, %c0_20] : memref<1x128xf32, #tpu.memory_space<vmem>>, vector<1x128xf32>
    %cst_21 = arith.constant dense<0.000000e+00> : vector<8x128xf32>
    %21 = tpu.matmul %18, %19, %cst_21 {dimension_numbers = #tpu.dot_dimension_numbers<[1], [0], [0], [1], [0, 0, 1, 1], [], []>} : vector<8x128xf32>, vector<128x128xf32>, vector<8x128xf32> -> vector<8x128xf32>
    %22 = vector.broadcast %20 : vector<1x128xf32> to vector<8x128xf32>
    %23 = arith.addf %21, %22 : vector<8x128xf32>
    %c0_22 = arith.constant 0 : index
    %c0_23 = arith.constant 0 : index
    %24 = vector.load %arg10[%c0_22, %c0_23] : memref<8x128xf32, #tpu.memory_space<vmem>>, vector<8x128xf32>
    tpu.vector_store %arg10[%c0_22, %c0_23], %23 {strides = array<i32>} : memref<8x128xf32, #tpu.memory_space<vmem>>, vector<8x128xf32>,
    return
  }
  func.func @transform_0(%arg0: i32) -> (i32, i32) {
    %c0_i32 = arith.constant 0 : i32
    %c0_i32_0 = arith.constant 0 : i32
    return %arg0, %c0_i32 : i32, i32
  }
  func.func @transform_1(%arg0: i32) -> (i32, i32) {
    %c0_i32 = arith.constant 0 : i32
    %c0_i32_0 = arith.constant 0 : i32
    return %arg0, %c0_i32 : i32, i32
  }
  func.func @transform_2(%arg0: i32) -> (i32, i32) {
    %c0_i32 = arith.constant 0 : i32
    %c0_i32_0 = arith.constant 0 : i32
    %c0_i32_1 = arith.constant 0 : i32
    return %c0_i32, %c0_i32_0 : i32, i32
  }
  func.func @transform_3(%arg0: i32) -> (i32, i32) {
    %c0_i32 = arith.constant 0 : i32
    %c0_i32_0 = arith.constant 0 : i32
    %c0_i32_1 = arith.constant 0 : i32
    return %c0_i32, %c0_i32_0 : i32, i32
  }
  func.func @transform_4(%arg0: i32) -> (i32, i32) {
    %c0_i32 = arith.constant 0 : i32
    %c0_i32_0 = arith.constant 0 : i32
    %c0_i32_1 = arith.constant 0 : i32
    return %c0_i32, %c0_i32_0 : i32, i32
  }
  func.func @transform_5(%arg0: i32) -> (i32, i32) {
    %c0_i32 = arith.constant 0 : i32
    %c0_i32_0 = arith.constant 0 : i32
    %c0_i32_1 = arith.constant 0 : i32
    return %c0_i32, %c0_i32_0 : i32, i32
  }
  func.func @transform_6(%arg0: i32) -> (i32, i32) {
    %c0_i32 = arith.constant 0 : i32
    %c0_i32_0 = arith.constant 0 : i32
    %c0_i32_1 = arith.constant 0 : i32
    return %c0_i32, %c0_i32_0 : i32, i32
  }
  func.func @transform_7(%arg0: i32) -> (i32, i32) {
    %c0_i32 = arith.constant 0 : i32
    %c0_i32_0 = arith.constant 0 : i32
    %c0_i32_1 = arith.constant 0 : i32
    return %c0_i32, %c0_i32_0 : i32, i32
  }
  func.func @transform_8(%arg0: i32) -> (i32, i32) {
    %c0_i32 = arith.constant 0 : i32
    %c0_i32_0 = arith.constant 0 : i32
    %c0_i32_1 = arith.constant 0 : i32
    return %c0_i32, %c0_i32_0 : i32, i32
  }
  func.func @transform_9(%arg0: i32) -> (i32, i32) {
    %c0_i32 = arith.constant 0 : i32
    %c0_i32_0 = arith.constant 0 : i32
    return %arg0, %c0_i32 : i32, i32
  }
}

</mosaic_0001>

<bundles_post_ra>
// kernel: tpu_custom_call.1
= control target key start
LH: loop header
LB: loop body
LE: loop exit
PB: predicated region body
PF: predicated region fallthrough
CT: control target
= control target key end

     0   :  { %14 = vsyncpa [#allocation3], 0  ;;  %s584_s0 = inlined_call_operand.hbm [shape: f32[8,128], index: 0, kind: input, shape index: {}]   ;;  %s585_s1 = inlined_call_operand.hbm [shape: f32[8,128], index: 1, kind: input, shape index: {}]   ;;  %s586_s2 = inlined_call_operand.hbm [shape: f32[128,128], index: 2, kind: input, shape index: {}]   ;;  %s587_s3 = inlined_call_operand.hbm [shape: f32[128,128], index: 3, kind: input, shape index: {}]   ;;  %s588_s4 = inlined_call_operand.vmem [shape: f32[1,128], index: 4, kind: input, shape index: {}]   ;;  %s589_s5 = inlined_call_operand.hbm [shape: f32[128,128], index: 5, kind: input, shape index: {}]   ;;  %s590_s6 = inlined_call_operand.vmem [shape: f32[1,128], index: 6, kind: input, shape index: {}]   ;;  %s591_s7 = inlined_call_operand.hbm [shape: f32[128,128], index: 7, kind: input, shape index: {}]   ;;  %s592_s8 = inlined_call_operand.vmem [shape: f32[1,128], index: 8, kind: input, shape index: {}]   ;;  %s593_s9 = inlined_call_operand.hbm [shape: f32[8,128], index: 9, kind: output, shape index: {}]  }
   0x1   :  { %15 = vsyncpa [#allocation6], 0 }
   0x2   :  { %16 = vsyncpa [#allocation9], 0 }
   0x3   :  { %17 = vsyncpa [#allocation12], 0  ;;  %s35_s11 = sshll.u32 %s585_s1, 4  ;;  %s36_s11 = int_to_ptr.hbm [resolvable:$true] %s35_s11 }
   0x4   :  { %18 = vsyncpa [#allocation4], 0  ;;  %s495_s12 = smov [#allocation5]   ;;  %s58_s16 = sshll.u32 %s587_s3, 4  ;;  %s59_s16 = int_to_ptr.hbm [resolvable:$true] %s58_s16 }
   0x5   :  { %s37_s13 = sshll.u32 %s495_s12, 4  ;;  %s496_s17 = smov [#allocation8]   ;;  %s38_s13 = int_to_ptr.vmem [resolvable:$true] %s37_s13 }
   0x6   :  { %40 = dma.hbm_to_vmem [thread:$0]  %s36_s11, 128, %s38_s13, [#allocation6]  }
   0x7   :  { %s60_s18 = sshll.u32 %s496_s17, 4  ;;  %s24_s21 = sshll.u32 %s584_s0, 4  ;;  %s61_s18 = int_to_ptr.vmem [resolvable:$true] %s60_s18  ;;  %s25_s21 = int_to_ptr.hbm [resolvable:$true] %s24_s21 }
   0x8   :  { %s497_s1 = smov 128   ;;  %s498_s22 = smov 8  }
   0x9   :  { %66 = dma.hbm_to_vmem [thread:$0]  %s59_s16, 2048, %s61_s18, [#allocation9], %s497_s1, %s497_s1, %s498_s22  }
   0xa   :  { %s45_s25 = sshll.u32 %s586_s2, 4  ;;  %s499_s26 = smov [#allocation2]   ;;  %s46_s25 = int_to_ptr.hbm [resolvable:$true] %s45_s25 }
   0xb   :  { %s26_s27 = sshll.u32 %s499_s26, 4  ;;  %s500_s3 = smov [#allocation7]   ;;  %s27_s27 = int_to_ptr.vmem [resolvable:$true] %s26_s27 }
   0xc   :  { %29 = dma.hbm_to_vmem [thread:$0]  %s25_s21, 128, %s27_s27, [#allocation3]  }
   0xd   :  { %s47_s28 = sshll.u32 %s500_s3, 4  ;;  %s73_s0 = sshll.u32 %s589_s5, 4  ;;  %s48_s28 = int_to_ptr.vmem [resolvable:$true] %s47_s28  ;;  %s74_s0 = int_to_ptr.hbm [resolvable:$true] %s73_s0 }
   0xe   :  { %53 = dma.hbm_to_vmem [thread:$0]  %s46_s25, 2048, %s48_s28, [#allocation6], %s497_s1, %s497_s1, %s498_s22  }
   0xf   :  { %s88_s12 = sshll.u32 %s591_s7, 4  ;;  %s501_s13 = smov [#allocation10]   ;;  %s89_s12 = int_to_ptr.hbm [resolvable:$true] %s88_s12 }
  0x10   :  { %s75_s2 = sshll.u32 %s501_s13, 4  ;;  %s502_s14 = smov [#allocation11]   ;;  %s76_s2 = int_to_ptr.vmem [resolvable:$true] %s75_s2 }
  0x11   :  { %81 = dma.hbm_to_vmem [thread:$0]  %s74_s0, 2048, %s76_s2, [#allocation9], %s497_s1, %s497_s1, %s498_s22  }
  0x12   :  { %s90_s15 = sshll.u32 %s502_s14, 4  ;;  %s91_s15 = int_to_ptr.vmem [resolvable:$true] %s90_s15 }
  0x13   :  { %96 = dma.hbm_to_vmem [thread:$0]  %s89_s12, 2048, %s91_s15, [#allocation12], %s497_s1, %s497_s1, %s498_s22  }
  0x14   :  { %485 = dma.done.wait [#allocation3], 128  }
  0x15   :  { %486 = vsyncadd [#allocation3], 4294967168 }
  0x16   :  { %487 = dma.done.wait [#allocation6], 2176  }
  0x17   :  { %488 = vsyncadd [#allocation6], 4294965120 }
  0x18   :  { %489 = dma.done.wait [#allocation9], 4096  }
  0x19   :  { %490 = vsyncadd [#allocation9], 4294963200 }
  0x1a   :  { %491 = dma.done.wait [#allocation12], 2048  }
  0x1b   :  { %492 = vsyncadd [#allocation12], 4294965248  ;;  %v156_v0 = vld [vmem:[#allocation8 + $0x78] sm:$0xff]  ;;  %v155_v2 = vld [vmem:[#allocation8 + $0x70] sm:$0xff]  ;;  %s503_s19 = smov [#allocation13]   ;;  %s292_s22 = sshll.u32 %s593_s9, 4  ;;  %s293_s22 = int_to_ptr.hbm [resolvable:$true] %s292_s22 }
  0x1c   :  { %v140_v1 = vld [vmem:[#allocation7 + $0x78] sm:$0xff]  ;;  %158 = vmatpush.msra.mxu0 %v156_v0  ;;  %v139_v3 = vld [vmem:[#allocation7 + $0x70] sm:$0xff]  ;;  %v154_v4 = vld [vmem:[#allocation8 + $0x68] sm:$0xff]  ;;  %s290_s20 = sshll.u32 %s503_s19, 4  ;;  %s291_s20 = int_to_ptr.vmem [resolvable:$true] %s290_s20 }
  0x1d   :  { %178 = vmatpush.msra.mxu1 %v140_v1  ;;  %v138_v5 = vld [vmem:[#allocation7 + $0x68] sm:$0xff]  ;;  %v153_v6 = vld [vmem:[#allocation8 + $0x60] sm:$0xff]  ;;  %v152_v8 = vld [vmem:[#allocation8 + $0x58] sm:$0xff] }
  0x1e   :  { %159 = vmatpush.msra.mxu0 %v155_v2  ;;  %v137_v7 = vld [vmem:[#allocation7 + $0x60] sm:$0xff]  ;;  %v136_v9 = vld [vmem:[#allocation7 + $0x58] sm:$0xff]  ;;  %v151_v10 = vld [vmem:[#allocation8 + $0x50] sm:$0xff] }
  0x1f   :  { %179 = vmatpush.msra.mxu1 %v139_v3  ;;  %v135_v11 = vld [vmem:[#allocation7 + $0x50] sm:$0xff]  ;;  %v150_v12 = vld [vmem:[#allocation8 + $0x48] sm:$0xff]  ;;  %v218_v14 = vld [vmem:[#allocation10 + $0x78] sm:$0xff] }
  0x20   :  { %160 = vmatpush.msra.mxu0 %v154_v4  ;;  %v134_v13 = vld [vmem:[#allocation7 + $0x48] sm:$0xff]  ;;  %v217_v15 = vld [vmem:[#allocation10 + $0x70] sm:$0xff]  ;;  %v149_v16 = vld [vmem:[#allocation8 + $0x40] sm:$0xff]  ;;  %223 = vmatpush.msra.mxu2 %v218_v14 }
  0x21   :  { %180 = vmatpush.msra.mxu1 %v138_v5  ;;  %v133_v17 = vld [vmem:[#allocation7 + $0x40] sm:$0xff]  ;;  %v216_v18 = vld [vmem:[#allocation10 + $0x68] sm:$0xff]  ;;  %v148_v19 = vld [vmem:[#allocation8 + $0x38] sm:$0xff] }
  0x22   :  { %161 = vmatpush.msra.mxu0 %v153_v6  ;;  %v132_v20 = vld [vmem:[#allocation7 + $0x38] sm:$0xff]  ;;  %224 = vmatpush.msra.mxu2 %v217_v15  ;;  %v215_v21 = vld [vmem:[#allocation10 + $0x60] sm:$0xff]  ;;  %v147_v22 = vld [vmem:[#allocation8 + $0x30] sm:$0xff] }
  0x23   :  { %181 = vmatpush.msra.mxu1 %v137_v7  ;;  %v131_v23 = vld [vmem:[#allocation7 + $0x30] sm:$0xff]  ;;  %v214_v24 = vld [vmem:[#allocation10 + $0x58] sm:$0xff]  ;;  %v146_v25 = vld [vmem:[#allocation8 + $0x28] sm:$0xff] }
  0x24   :  { %162 = vmatpush.msra.mxu0 %v152_v8  ;;  %225 = vmatpush.msra.mxu2 %v216_v18  ;;  %v130_v26 = vld [vmem:[#allocation7 + $0x28] sm:$0xff]  ;;  %v213_v27 = vld [vmem:[#allocation10 + $0x50] sm:$0xff]  ;;  %v145_v28 = vld [vmem:[#allocation8 + $0x20] sm:$0xff] }
  0x25   :  { %182 = vmatpush.msra.mxu1 %v136_v9  ;;  %v129_v29 = vld [vmem:[#allocation7 + $0x20] sm:$0xff]  ;;  %v212_v30 = vld [vmem:[#allocation10 + $0x48] sm:$0xff]  ;;  %v144_v31 = vld [vmem:[#allocation8 + $0x18] sm:$0xff] }
  0x26   :  { %163 = vmatpush.msra.mxu0 %v151_v10  ;;  %226 = vmatpush.msra.mxu2 %v215_v21  ;;  %v128_v32 = vld [vmem:[#allocation7 + $0x18] sm:$0xff]  ;;  %v211_v33 = vld [vmem:[#allocation10 + $0x40] sm:$0xff]  ;;  %v143_v34 = vld [vmem:[#allocation8 + $0x10] sm:$0xff] }
  0x27   :  { %183 = vmatpush.msra.mxu1 %v135_v11  ;;  %v127_v35 = vld [vmem:[#allocation7 + $0x10] sm:$0xff]  ;;  %v210_v36 = vld [vmem:[#allocation10 + $0x38] sm:$0xff]  ;;  %v142_v37 = vld [vmem:[#allocation8 + $0x8] sm:$0xff] }
  0x28   :  { %164 = vmatpush.msra.mxu0 %v150_v12  ;;  %227 = vmatpush.msra.mxu2 %v214_v24  ;;  %v126_v38 = vld [vmem:[#allocation7 + $0x8] sm:$0xff]  ;;  %v209_v39 = vld [vmem:[#allocation10 + $0x30] sm:$0xff]  ;;  %v141_v40 = vld [vmem:[#allocation8] sm:$0xff] }
  0x29   :  { %184 = vmatpush.msra.mxu1 %v134_v13  ;;  %v125_v41 = vld [vmem:[#allocation7] sm:$0xff]  ;;  %v124_v42 = vld [vmem:[#allocation5] sm:$0xff]  ;;  %v123_v43 = vld [vmem:[#allocation2] sm:$0xff] }
  0x2a   :  { %165 = vmatpush.msra.mxu0 %v149_v16  ;;  %228 = vmatpush.msra.mxu2 %v213_v27  ;;  %v208_v44 = vld [vmem:[#allocation10 + $0x28] sm:$0xff]  ;;  %v207_v45 = vld [vmem:[#allocation10 + $0x20] sm:$0xff]  ;;  %v206_v46 = vld [vmem:[#allocation10 + $0x18] sm:$0xff] }
  0x2b   :  { %185 = vmatpush.msra.mxu1 %v133_v17  ;;  %v205_v47 = vld [vmem:[#allocation10 + $0x10] sm:$0xff]  ;;  %v204_v48 = vld [vmem:[#allocation10 + $0x8] sm:$0xff]  ;;  %v203_v49 = vld [vmem:[#allocation10] sm:$0xff] }
  0x2c   :  { %166 = vmatpush.msra.mxu0 %v148_v19  ;;  %229 = vmatpush.msra.mxu2 %v212_v30  ;;  %v259_v50 = vld [vmem:[#allocation11 + $0x78] sm:$0xff]  ;;  %v258_v51 = vld [vmem:[#allocation11 + $0x70] sm:$0xff]  ;;  %v257_v52 = vld [vmem:[#allocation11 + $0x68] sm:$0xff] }
  0x2d   :  { %186 = vmatpush.msra.mxu1 %v132_v20  ;;  %264 = vmatpush.msra.mxu3 %v259_v50  ;;  %v256_v53 = vld [vmem:[#allocation11 + $0x60] sm:$0xff]  ;;  %v255_v54 = vld [vmem:[#allocation11 + $0x58] sm:$0xff]  ;;  %v254_v55 = vld [vmem:[#allocation11 + $0x50] sm:$0xff] }
  0x2e   :  { %167 = vmatpush.msra.mxu0 %v147_v22  ;;  %230 = vmatpush.msra.mxu2 %v211_v33  ;;  %v253_v56 = vld [vmem:[#allocation11 + $0x48] sm:$0xff]  ;;  %v252_v57 = vld [vmem:[#allocation11 + $0x40] sm:$0xff]  ;;  %v251_v58 = vld [vmem:[#allocation11 + $0x38] sm:$0xff] }
  0x2f   :  { %187 = vmatpush.msra.mxu1 %v131_v23  ;;  %265 = vmatpush.msra.mxu3 %v258_v51  ;;  %v250_v59 = vld [vmem:[#allocation11 + $0x30] sm:$0xff]  ;;  %v249_v60 = vld [vmem:[#allocation11 + $0x28] sm:$0xff]  ;;  %v248_v61 = vld [vmem:[#allocation11 + $0x20] sm:$0xff] }
  0x30   :  { %168 = vmatpush.msra.mxu0 %v146_v25  ;;  %231 = vmatpush.msra.mxu2 %v210_v36  ;;  %v247_v62 = vld [vmem:[#allocation11 + $0x18] sm:$0xff]  ;;  %v314_v63 = vld [vmem:[%s588_s4] ss:$0 sm:$0xff]  ;;  %v245_v6 = vld [vmem:[#allocation11 + $0x8] sm:$0xff] }
  0x31   :  { %188 = vmatpush.msra.mxu1 %v130_v26  ;;  %266 = vmatpush.msra.mxu3 %v257_v52  ;;  %v246_v5 = vld [vmem:[#allocation11 + $0x10] sm:$0xff]  ;;  %v244_v7 = vld [vmem:[#allocation11] sm:$0xff] }
  0x32   :  { %169 = vmatpush.msra.mxu0 %v145_v28  ;;  %232 = vmatpush.msra.mxu2 %v209_v39  ;;  %v315_v8 = vld [vmem:[%s590_s6] ss:$0 sm:$0xff] }
  0x33   :  { %189 = vmatpush.msra.mxu1 %v129_v29  ;;  %267 = vmatpush.msra.mxu3 %v256_v53  ;;  %v316_v12 = vld [vmem:[%s592_s8] ss:$0 sm:$0xff] }
  0x34   :  { %170 = vmatpush.msra.mxu0 %v144_v31  ;;  %233 = vmatpush.msra.mxu2 %v208_v44 }
  0x35   :  { %190 = vmatpush.msra.mxu1 %v128_v32  ;;  %268 = vmatpush.msra.mxu3 %v255_v54 }
  0x36   :  { %171 = vmatpush.msra.mxu0 %v143_v34  ;;  %234 = vmatpush.msra.mxu2 %v207_v45 }
  0x37   :  { %191 = vmatpush.msra.mxu1 %v127_v35  ;;  %269 = vmatpush.msra.mxu3 %v254_v55 }
  0x38   :  { %172 = vmatpush.msra.mxu0 %v142_v37  ;;  %235 = vmatpush.msra.mxu2 %v206_v46 }
  0x39   :  { %192 = vmatpush.msra.mxu1 %v126_v38  ;;  %270 = vmatpush.msra.mxu3 %v253_v56 }
  0x3a   :  { %173 = vmatpush.msra.mxu0 %v141_v40  ;;  %236 = vmatpush.msra.mxu2 %v205_v47 }
  0x3b   :  { %193 = vmatpush.msra.mxu1 %v125_v41  ;;  %174 = vmatmul.f32.vlgmr.msra.gmra.mxu0 %v124_v42 }
  0x3c   :  { %194 = vmatmul.f32.vlgmr.msra.gmra.mxu1 %v123_v43  ;;  %237 = vmatpush.msra.mxu2 %v204_v48 }
  0x3d   :  { %271 = vmatpush.msra.mxu3 %v252_v57 }
  0x3e   :  { %238 = vmatpush.msra.mxu2 %v203_v49 }
  0x3f   :  { %272 = vmatpush.msra.mxu3 %v251_v58 }
  0x41   :  { %273 = vmatpush.msra.mxu3 %v250_v59 }
  0x43   :  { %274 = vmatpush.msra.mxu3 %v249_v60 }
  0x45   :  { %275 = vmatpush.msra.mxu3 %v248_v61 }
  0x47   :  { %276 = vmatpush.msra.mxu3 %v247_v62 }
  0x49   :  { %277 = vmatpush.msra.mxu3 %v246_v5 }
  0x4b   :  { %278 = vmatpush.msra.mxu3 %v245_v6 }
  0x4d   :  { %279 = vmatpush.msra.mxu3 %v244_v7 }
  0xb8   :  { %v175_v0 = vpop.f32.mrf.mxu0 }
  0xb9   :  { %v195_v1 = vpop.f32.mrf.mxu1 }
  0xba   :  { %v196_v2 = vadd.f32 %v195_v1, %v175_v0 }
  0xbc   :  { %v201_v3 = vadd.f32 %v314_v63, %v196_v2 }
  0xbe   :  { %v202_v4 = vmax.f32 %v201_v3, 0.0 }
  0xc0   :  { %239 = vmatmul.f32.vlgmr.msra.gmra.mxu2 %v202_v4 }
 0x143   :  { %v240_v9 = vpop.f32.mrf.mxu2 }
 0x144   :  { %v241_v10 = vadd.f32 %v315_v8, %v240_v9 }
 0x146   :  { %v243_v11 = vmax.f32 %v241_v10, 0.0 }
 0x148   :  { %280 = vmatmul.f32.vlgmr.msra.gmra.mxu3 %v243_v11 }
 0x1cb   :  { %v281_v13 = vpop.f32.mrf.mxu3 }
 0x1cc   :  { %v282_v14 = vadd.f32 %v316_v12, %v281_v13 }
 0x1ce   :  { %284 = vst [vmem:[#allocation13] sm:$0xff] %v282_v14 }
 0x1cf   :  { %295 = dma.vmem_to_hbm [thread:$0]  %s291_s20, 128, %s293_s22, [#allocation4]  }
 0x1d0   :  { %493 = dma.done.wait [#allocation4], 128  }
 0x1d1   :  { %494 = vsyncadd [#allocation4], 4294967168 }
 0x1d2   :  { %300 = vsyncpa [#allocation3], 1 }
 0x1d3   :  { %301 = vsyncpa [#allocation6], 1 }
 0x1d4   :  { %302 = vsyncpa [#allocation9], 1 }
 0x1d5   :  { %303 = vsyncpa [#allocation12], 1 }
 0x1d6   :  { %304 = vsyncpa [#allocation4], 1 }

</bundles_post_ra>
